<compile_context>
chip_gen: v5e
topology: v5e:2x2
jax: 0.10.0
libtpu: 0.0.40
codegen_flags: <defaults>
</compile_context>

<pallas_src>
import jax
import jax.numpy as jnp
import numpy as np
from jax import lax
from jax.experimental import pallas as pl
from jax.experimental.pallas import tpu as pltpu

EPS = 1e-5  # nn.GroupNorm default eps


# --------------------------------------------------------------------------------------
# per-generation VMEM budget (leave headroom for compiler scratch / double buffers)
# --------------------------------------------------------------------------------------
def _pick_vmem_limit():
    try:
        cap = getattr(pltpu.get_tpu_info(), "vmem_capacity_bytes", None)
        if cap:
            return int(cap * 0.85)          # ~109 MiB on v5e/v6e, ~54 MiB on v7x
    except Exception:
        pass
    return 48 * 1024 * 1024                 # safe fallback on every generation


def _pick_tile(total, target, align=8):
    """Largest divisor of `total` that is <= target and a multiple of `align`
    (falls back to `total`, which is always a legal block extent)."""
    if total <= target:
        return total
    for cand in range(min(target, total), 0, -1):
        if total % cand == 0 and cand % align == 0:
            return cand
    return total


def _stage2_resident_vmem_bytes(HW, C, tq):
    """Conservative stage-2 VMEM estimate for the K/V-resident path."""
    db = 2
    kv = 2 * HW * C * 2 * db                # K + V bf16 (counted double-buffered)
    q_and_x = tq * C * (2 + 4) * db         # q bf16 + f32 residual
    out = tq * C * 4 * db
    w = (C * C * 2 + 2 * C * 4) * db
    interm = 2 * tq * HW * 4                # s / p f32 intermediates
    return kv + q_and_x + out + w + interm


# --------------------------------------------------------------------------------------
# stage 1a: GroupNorm statistics (HW-tiled so VMEM stays bounded at any resolution)
# --------------------------------------------------------------------------------------
def _gn_stats_kernel(x_ref, gavg_ref, mean_ref, rstd_ref, s1_scr, s2_scr):
    hi = pl.program_id(1)

    @pl.when(hi == 0)
    def _():
        s1_scr[...] = jnp.zeros_like(s1_scr)
        s2_scr[...] = jnp.zeros_like(s2_scr)

    x = x_ref[0]                                          # (t_s, C) f32
    s1_scr[...] += jnp.sum(x, axis=0, keepdims=True)
    s2_scr[...] += jnp.sum(x * x, axis=0, keepdims=True)

    @pl.when(hi == pl.num_programs(1) - 1)
    def _():
        # gavg[i, j] = 1/(HW*cg) iff channels i and j share a group, so (sum @ gavg)
        # yields the per-group mean broadcast back to every channel.
        gavg = gavg_ref[...]
        mean = jnp.dot(s1_scr[...], gavg, preferred_element_type=jnp.float32)
        mean_sq = jnp.dot(s2_scr[...], gavg, preferred_element_type=jnp.float32)
        # single-pass E[x^2]-E[x]^2 in f32; clamp guards tiny negative round-off
        var = jnp.maximum(mean_sq - mean * mean, 0.0)
        mean_ref[0] = mean
        rstd_ref[0] = lax.rsqrt(var + EPS)


# --------------------------------------------------------------------------------------
# stage 1b: normalize + q/k/v projections (HW-tiled; scale already folded into wq/bq)
# --------------------------------------------------------------------------------------
def _gn_qkv_kernel(x_ref, mean_ref, rstd_ref, gamma_ref, beta_ref,
                   wq_ref, wk_ref, wv_ref, bq_ref, bk_ref, bv_ref,
                   q_ref, k_ref, v_ref):
    x = x_ref[0]                                          # (t_p, C) f32
    xn = (x - mean_ref[0]) * (rstd_ref[0] * gamma_ref[...]) + beta_ref[...]
    xn16 = xn.astype(jnp.bfloat16)
    q = jnp.dot(xn16, wq_ref[...], preferred_element_type=jnp.float32) + bq_ref[...]
    k = jnp.dot(xn16, wk_ref[...], preferred_element_type=jnp.float32) + bk_ref[...]
    v = jnp.dot(xn16, wv_ref[...], preferred_element_type=jnp.float32) + bv_ref[...]
    q_ref[0] = q.astype(jnp.bfloat16)
    k_ref[0] = k.astype(jnp.bfloat16)
    v_ref[0] = v.astype(jnp.bfloat16)


# --------------------------------------------------------------------------------------
# stage 2 (primary): K/V VMEM-resident attention + out projection + residual
# --------------------------------------------------------------------------------------
def _attn_resident_kernel(q_ref, k_ref, v_ref, x_ref, wout_ref, bout_ref, o_ref):
    q = q_ref[0]                                          # (tq, C) bf16, pre-scaled
    k = k_ref[0]                                          # (HW, C) bf16, resident across qi
    s = lax.dot_general(q, k, (((1,), (1,)), ((), ())),
                        preferred_element_type=jnp.float32)          # (tq, HW)
    m = jnp.max(s, axis=-1, keepdims=True)
    p = jnp.exp(s - m)
    l = jnp.sum(p, axis=-1, keepdims=True)
    out = jnp.dot(p.astype(jnp.bfloat16), v_ref[0],
                  preferred_element_type=jnp.float32)
    out = out * pl.reciprocal(l, approx=True)             # ~1e-3 rel err; ok vs tolerance
    y = (jnp.dot(out.astype(jnp.bfloat16), wout_ref[...],
                 preferred_element_type=jnp.float32)
         + bout_ref[...] + x_ref[0])
    o_ref[0] = y                                          # lane-dense (tq, C) store


# --------------------------------------------------------------------------------------
# stage 2 (fallback): flash online softmax over kv tiles (when K/V don't fit VMEM)
# --------------------------------------------------------------------------------------
def _attn_flash_kernel(q_ref, k_ref, v_ref, x_ref, wout_ref, bout_ref,
                       o_ref, m_scr, l_scr, acc_scr):
    ki = pl.program_id(2)

    @pl.when(ki == 0)
    def _():
        m_scr[...] = jnp.full_like(m_scr, -jnp.inf)
        l_scr[...] = jnp.zeros_like(l_scr)
        acc_scr[...] = jnp.zeros_like(acc_scr)

    q = q_ref[0]                                          # (tq, C) bf16, pre-scaled
    k = k_ref[0]                                          # (tk, C) bf16
    s = lax.dot_general(q, k, (((1,), (1,)), ((), ())),
                        preferred_element_type=jnp.float32)          # (tq, tk)

    # m/l scratch is lane-dense (tq, 128): full-width vld/vst in the hot loop,
    # scalar (tq, 1) views are derived in registers for the broadcasts.
    m_prev = m_scr[...]                                   # (tq, 128)
    m_cur = jnp.max(s, axis=-1, keepdims=True)            # (tq, 1)
    m_new = jnp.maximum(m_prev, m_cur)                    # (tq, 128)
    m_scr[...] = m_new

    m_prev_c = jnp.max(m_prev, axis=-1, keepdims=True)    # (tq, 1)
    m_new_c = jnp.maximum(m_prev_c, m_cur)                # (tq, 1)
    alpha = jnp.exp(m_prev_c - m_new_c)                   # (tq, 1)

    p = jnp.exp(s - m_new_c)                              # (tq, tk)
    l_scr[...] = alpha * l_scr[...] + jnp.sum(p, axis=-1, keepdims=True)
    acc_scr[...] = alpha * acc_scr[...] + jnp.dot(
        p.astype(jnp.bfloat16), v_ref[0], preferred_element_type=jnp.float32)

    @pl.when(ki == pl.num_programs(2) - 1)
    def _():
        l_c = jnp.max(l_scr[...], axis=-1, keepdims=True)   # all lanes equal
        out = acc_scr[...] * pl.reciprocal(l_c, approx=True)
        y = (jnp.dot(out.astype(jnp.bfloat16), wout_ref[...],
                     preferred_element_type=jnp.float32)
             + bout_ref[...] + x_ref[0])
        o_ref[0] = y


# --------------------------------------------------------------------------------------
# wrapper
# --------------------------------------------------------------------------------------
def attention_block(x_nchw, params, num_groups, *, q_tile=None, kv_tile=None,
                    stats_hw_tile=None, proj_hw_tile=None, force_flash=False):
    """x_nchw: (B, C, H, W) float32 -> (B, C, H, W) float32."""
    B, C, H, W = x_nchw.shape
    HW = H * W
    G = num_groups
    assert C % G == 0
    cg = C // G

    vmem_limit = _pick_vmem_limit()

    def cparams(sem):
        return pltpu.CompilerParams(dimension_semantics=sem,
                                    vmem_limit_bytes=vmem_limit)

    # NCHW -> (B, HW, C)
    # TODO(synk): keep activations NHWC end-to-end so this HBM round trip disappears.
    x = jnp.transpose(x_nchw, (0, 2, 3, 1)).reshape(B, HW, C).astype(jnp.float32)

    gamma = params["gn_weight"].reshape(1, C).astype(jnp.float32)
    beta = params["gn_bias"].reshape(1, C).astype(jnp.float32)

    # conv weights (O, I, 1, 1) -> lane-dense (I, O) matmul weights; fold the
    # attention scale C**-0.5 into wq/bq on the host (one-time op).
    scale = float(C) ** (-0.5)
    w_qkv = params["qkv_weight"].reshape(3 * C, C).astype(jnp.float32)
    b_qkv = params["qkv_bias"].reshape(3 * C).astype(jnp.float32)
    wq = (w_qkv[:C] * scale).T.astype(jnp.bfloat16)
    wk = w_qkv[C:2 * C].T.astype(jnp.bfloat16)
    wv = w_qkv[2 * C:].T.astype(jnp.bfloat16)
    bq = (b_qkv[:C] * scale).reshape(1, C).astype(jnp.float32)
    bk = b_qkv[C:2 * C].reshape(1, C).astype(jnp.float32)
    bv = b_qkv[2 * C:].reshape(1, C).astype(jnp.float32)
    wout = params["out_weight"].reshape(C, C).T.astype(jnp.bfloat16)
    bout = params["out_bias"].reshape(1, C).astype(jnp.float32)

    # fused group-average matrix for GroupNorm stats
    grp = jnp.arange(C) // cg
    gavg = (grp[:, None] == grp[None, :]).astype(jnp.float32) / float(HW * cg)

    # ---- stage 1a: GroupNorm statistics (HW-tiled reduction) ----
    t_s = stats_hw_tile if stats_hw_tile is not None else _pick_tile(HW, 2048)
    assert HW % t_s == 0
    mean, rstd = pl.pallas_call(
        _gn_stats_kernel,
        out_shape=(jax.ShapeDtypeStruct((B, 1, C), jnp.float32),
                   jax.ShapeDtypeStruct((B, 1, C), jnp.float32)),
        grid_spec=pltpu.PrefetchScalarGridSpec(
            num_scalar_prefetch=0,
            grid=(B, HW // t_s),
            in_specs=[
                pl.BlockSpec((1, t_s, C), lambda b, hi: (b, hi, 0)),   # x
                pl.BlockSpec((C, C), lambda b, hi: (0, 0)),            # group-average matrix
            ],
            out_specs=[pl.BlockSpec((1, 1, C), lambda b, hi: (b, 0, 0))] * 2,
            scratch_shapes=[pltpu.VMEM((1, C), jnp.float32),
                            pltpu.VMEM((1, C), jnp.float32)],
        ),
        compiler_params=cparams(("parallel", "arbitrary")),
    )(x, gavg)

    # ---- stage 1b: normalize + q/k/v projections (HW-tiled) ----
    t_p = proj_hw_tile if proj_hw_tile is not None else _pick_tile(HW, 1024)
    assert HW % t_p == 0
    q, k, v = pl.pallas_call(
        _gn_qkv_kernel,
        out_shape=tuple(jax.ShapeDtypeStruct((B, HW, C), jnp.bfloat16) for _ in range(3)),
        grid_spec=pltpu.PrefetchScalarGridSpec(
            num_scalar_prefetch=0,
            grid=(B, HW // t_p),
            in_specs=[
                pl.BlockSpec((1, t_p, C), lambda b, hi: (b, hi, 0)),   # x
                pl.BlockSpec((1, 1, C), lambda b, hi: (b, 0, 0)),      # mean
                pl.BlockSpec((1, 1, C), lambda b, hi: (b, 0, 0)),      # rstd
                pl.BlockSpec((1, C), lambda b, hi: (0, 0)),            # gamma
                pl.BlockSpec((1, C), lambda b, hi: (0, 0)),            # beta
                pl.BlockSpec((C, C), lambda b, hi: (0, 0)),            # wq
                pl.BlockSpec((C, C), lambda b, hi: (0, 0)),            # wk
                pl.BlockSpec((C, C), lambda b, hi: (0, 0)),            # wv
                pl.BlockSpec((1, C), lambda b, hi: (0, 0)),            # bq
                pl.BlockSpec((1, C), lambda b, hi: (0, 0)),            # bk
                pl.BlockSpec((1, C), lambda b, hi: (0, 0)),            # bv
            ],
            out_specs=[pl.BlockSpec((1, t_p, C), lambda b, hi: (b, hi, 0))] * 3,
        ),
        compiler_params=cparams(("parallel", "parallel")),
    )(x, mean, rstd, gamma, beta, wq, wk, wv, bq, bk, bv)

    # ---- stage 2: attention + output projection + residual ----
    tq_res = q_tile if q_tile is not None else _pick_tile(HW, 256)
    assert HW % tq_res == 0
    resident = ((not force_flash)
                and (kv_tile is None or kv_tile >= HW)
                and _stage2_resident_vmem_bytes(HW, C, tq_res) <= 0.75 * vmem_limit)

    if resident:
        # K/V fetched once per batch element (constant index across qi) -> no
        # re-streaming, no online-softmax bookkeeping.
        tq = tq_res
        y = pl.pallas_call(
            _attn_resident_kernel,
            out_shape=jax.ShapeDtypeStruct((B, HW, C), jnp.float32),
            grid_spec=pltpu.PrefetchScalarGridSpec(
                num_scalar_prefetch=0,
                grid=(B, HW // tq),
                in_specs=[
                    pl.BlockSpec((1, tq, C), lambda b, qi: (b, qi, 0)),   # q (bf16)
                    pl.BlockSpec((1, HW, C), lambda b, qi: (b, 0, 0)),    # k (resident)
                    pl.BlockSpec((1, HW, C), lambda b, qi: (b, 0, 0)),    # v (resident)
                    pl.BlockSpec((1, tq, C), lambda b, qi: (b, qi, 0)),   # x residual (f32)
                    pl.BlockSpec((C, C), lambda b, qi: (0, 0)),           # wout
                    pl.BlockSpec((1, C), lambda b, qi: (0, 0)),           # bout
                ],
                out_specs=pl.BlockSpec((1, tq, C), lambda b, qi: (b, qi, 0)),
            ),
            compiler_params=cparams(("parallel", "parallel")),
        )(q, k, v, x, wout, bout)
    else:
        # streamed K/V: bigger q-tile raises arithmetic intensity per k/v byte
        tq = q_tile if q_tile is not None else _pick_tile(HW, 512)
        tk = kv_tile if kv_tile is not None else _pick_tile(HW, 512)
        assert HW % tq == 0 and HW % tk == 0
        y = pl.pallas_call(
            _attn_flash_kernel,
            out_shape=jax.ShapeDtypeStruct((B, HW, C), jnp.float32),
            grid_spec=pltpu.PrefetchScalarGridSpec(
                num_scalar_prefetch=0,
                grid=(B, HW // tq, HW // tk),            # kv (reduction) axis last
                in_specs=[
                    pl.BlockSpec((1, tq, C), lambda b, qi, ki: (b, qi, 0)),   # q
                    pl.BlockSpec((1, tk, C), lambda b, qi, ki: (b, ki, 0)),   # k
                    pl.BlockSpec((1, tk, C), lambda b, qi, ki: (b, ki, 0)),   # v
                    pl.BlockSpec((1, tq, C), lambda b, qi, ki: (b, qi, 0)),   # x residual
                    pl.BlockSpec((C, C), lambda b, qi, ki: (0, 0)),           # wout
                    pl.BlockSpec((1, C), lambda b, qi, ki: (0, 0)),           # bout
                ],
                out_specs=pl.BlockSpec((1, tq, C), lambda b, qi, ki: (b, qi, 0)),
                scratch_shapes=[
                    pltpu.VMEM((tq, 128), jnp.float32),   # running max (lane-dense)
                    pltpu.VMEM((tq, 128), jnp.float32),   # running denom (lane-dense)
                    pltpu.VMEM((tq, C), jnp.float32),     # output accumulator
                ],
            ),
            compiler_params=cparams(("parallel", "parallel", "arbitrary")),
        )(q, k, v, x, wout, bout)

    # (B, HW, C) -> NCHW
    return jnp.transpose(y.reshape(B, H, W, C), (0, 3, 1, 2))


# --------------------------------------------------------------------------------------
# pure-JAX f32 reference mirroring the PyTorch module
# --------------------------------------------------------------------------------------
def attention_block_reference(x_nchw, params, num_groups):
    B, C, H, W = x_nchw.shape
    G = num_groups
    x = x_nchw.astype(jnp.float32)

    xg = x.reshape(B, G, C // G, H, W)
    mean = jnp.mean(xg, axis=(2, 3, 4), keepdims=True)
    var = jnp.mean((xg - mean) ** 2, axis=(2, 3, 4), keepdims=True)
    xn = ((xg - mean) / jnp.sqrt(var + EPS)).reshape(B, C, H, W)
    xn = xn * params["gn_weight"][None, :, None, None] + params["gn_bias"][None, :, None, None]

    wqkv = params["qkv_weight"].reshape(3 * C, C)
    qkv = jnp.einsum("oc,bchw->bohw", wqkv, xn) + params["qkv_bias"][None, :, None, None]
    q, k, v = qkv[:, :C], qkv[:, C:2 * C], qkv[:, 2 * C:]

    q = q.transpose(0, 2, 3, 1).reshape(B, H * W, C)
    k = k.reshape(B, C, H * W)
    v = v.transpose(0, 2, 3, 1).reshape(B, H * W, C)
    dots = jnp.einsum("bqc,bck->bqk", q, k) * C ** (-0.5)
    attn = jax.nn.softmax(dots, axis=-1)
    out = jnp.einsum("bqk,bkc->bqc", attn, v)
    out = out.reshape(B, H, W, C).transpose(0, 3, 1, 2)

    wout = params["out_weight"].reshape(C, C)
    y = jnp.einsum("oc,bchw->bohw", wout, out) + params["out_bias"][None, :, None, None]
    return y + x


if __name__ == "__main__":
    B, C, H, W = 2, 64, 16, 16
    NUM_GROUPS = 32

    key = jax.random.PRNGKey(0)
    k_x, k1, k2, k3, k4, k5, k6 = jax.random.split(key, 7)

    x = jax.random.normal(k_x, (B, C, H, W), jnp.float32)

    params = {
        "gn_weight": 1.0 + 0.1 * jax.random.normal(k1, (C,), jnp.float32),
        "gn_bias": 0.1 * jax.random.normal(k2, (C,), jnp.float32),
        "qkv_weight": 0.1 * jax.random.normal(k3, (3 * C, C, 1, 1), jnp.float32),
        "qkv_bias": 0.1 * jax.random.normal(k4, (3 * C,), jnp.float32),
        "out_weight": 0.1 * jax.random.normal(k5, (C, C, 1, 1), jnp.float32),
        "out_bias": 0.1 * jax.random.normal(k6, (C,), jnp.float32),
    }

    y_ref = attention_block_reference(x, params, NUM_GROUPS)

    # primary path: K/V VMEM-resident (no online softmax), single stage-1 tile
    y = jax.block_until_ready(attention_block(x, params, NUM_GROUPS))
    # bf16 MXU operands (f32 accumulation) vs pure-f32 reference -> looser tolerance
    np.testing.assert_allclose(np.asarray(y), np.asarray(y_ref), atol=5e-2, rtol=5e-2)

    # fallback path: flash online softmax + HW-tiled stage 1 (exercised explicitly)
    y2 = jax.block_until_ready(attention_block(
        x, params, NUM_GROUPS, q_tile=128, kv_tile=128,
        stats_hw_tile=128, proj_hw_tile=128, force_flash=True))
    np.testing.assert_allclose(np.asarray(y2), np.asarray(y_ref), atol=5e-2, rtol=5e-2)

    print("KERNEL_OK")
</pallas_src>

<mosaic_0001>
module attributes {stable_mosaic.version = 11 : i64} {
  func.func @_gn_stats_kernel(%arg0: i32, %arg1: i32, %arg2: memref<1x256x64xf32, #tpu.memory_space<vmem>>, %arg3: memref<64x64xf32, #tpu.memory_space<vmem>>, %arg4: memref<1x1x64xf32, #tpu.memory_space<vmem>>, %arg5: memref<1x1x64xf32, #tpu.memory_space<vmem>>, %arg6: memref<1x64xf32, #tpu.memory_space<vmem>>, %arg7: memref<1x64xf32, #tpu.memory_space<vmem>>) attributes {dimension_semantics = [#tpu.dimension_semantics<parallel>, #tpu.dimension_semantics<arbitrary>], iteration_bounds = array<i64: 2, 1>, scalar_prefetch = 0 : i64, scratch_operands = 2 : i64, tpu.core_type = #tpu.core_type<tc>, window_params = [{transform_indices = @transform_0, window_bounds = array<i64: 1, 256, 64>}, {pipeline_mode = #tpu.pipeline_mode<synchronous>, transform_indices = @transform_1, window_bounds = array<i64: 64, 64>}, {transform_indices = @transform_2, window_bounds = array<i64: 1, 1, 64>}, {transform_indices = @transform_3, window_bounds = array<i64: 1, 1, 64>}]} {
    %c0_i32 = arith.constant 0 : i32
    %0 = arith.cmpi eq, %arg1, %c0_i32 : i32
    %1 = arith.extui %0 : i1 to i32
    %c0_i32_0 = arith.constant 0 : i32
    %2 = arith.cmpi ne, %1, %c0_i32_0 : i32
    scf.if %2 {
      %cst_14 = arith.constant 0.000000e+00 : f32
      %19 = vector.broadcast %cst_14 : f32 to vector<1x64xf32>
      %c0_15 = arith.constant 0 : index
      %c0_16 = arith.constant 0 : index
      %20 = vector.load %arg6[%c0_15, %c0_16] : memref<1x64xf32, #tpu.memory_space<vmem>>, vector<1x64xf32>
      tpu.vector_store %arg6[%c0_15, %c0_16], %19 {strides = array<i32>} : memref<1x64xf32, #tpu.memory_space<vmem>>, vector<1x64xf32>,
      %cst_17 = arith.constant 0.000000e+00 : f32
      %21 = vector.broadcast %cst_17 : f32 to vector<1x64xf32>
      %c0_18 = arith.constant 0 : index
      %c0_19 = arith.constant 0 : index
      %22 = vector.load %arg7[%c0_18, %c0_19] : memref<1x64xf32, #tpu.memory_space<vmem>>, vector<1x64xf32>
      tpu.vector_store %arg7[%c0_18, %c0_19], %21 {strides = array<i32>} : memref<1x64xf32, #tpu.memory_space<vmem>>, vector<1x64xf32>,
    } else {
    }
    %c0 = arith.constant 0 : index
    %c0_1 = arith.constant 0 : index
    %c0_2 = arith.constant 0 : index
    %3 = vector.load %arg2[%c0, %c0_1, %c0_2] : memref<1x256x64xf32, #tpu.memory_space<vmem>>, vector<1x256x64xf32>
    %4 = vector.shape_cast %3 : vector<1x256x64xf32> to vector<256x64xf32>
    %c0_3 = arith.constant 0 : index
    %c0_4 = arith.constant 0 : index
    %5 = vector.load %arg6[%c0_3, %c0_4] : memref<1x64xf32, #tpu.memory_space<vmem>>, vector<1x64xf32>
    %cst = arith.constant dense<0.000000e+00> : vector<64xf32>
    %6 = vector.multi_reduction <add>, %4, %cst [0] : vector<256x64xf32> to vector<64xf32>
    %7 = vector.shape_cast %6 : vector<64xf32> to vector<1x64xf32>
    %8 = arith.addf %5, %7 : vector<1x64xf32>
    %c0_5 = arith.constant 0 : index
    %c0_6 = arith.constant 0 : index
    %9 = vector.load %arg6[%c0_5, %c0_6] : memref<1x64xf32, #tpu.memory_space<vmem>>, vector<1x64xf32>
    tpu.vector_store %arg6[%c0_5, %c0_6], %8 {strides = array<i32>} : memref<1x64xf32, #tpu.memory_space<vmem>>, vector<1x64xf32>,
    %c0_7 = arith.constant 0 : index
    %c0_8 = arith.constant 0 : index
    %10 = vector.load %arg7[%c0_7, %c0_8] : memref<1x64xf32, #tpu.memory_space<vmem>>, vector<1x64xf32>
    %11 = arith.mulf %4, %4 : vector<256x64xf32>
    %cst_9 = arith.constant dense<0.000000e+00> : vector<64xf32>
    %12 = vector.multi_reduction <add>, %11, %cst_9 [0] : vector<256x64xf32> to vector<64xf32>
    %13 = vector.shape_cast %12 : vector<64xf32> to vector<1x64xf32>
    %14 = arith.addf %10, %13 : vector<1x64xf32>
    %c0_10 = arith.constant 0 : index
    %c0_11 = arith.constant 0 : index
    %15 = vector.load %arg7[%c0_10, %c0_11] : memref<1x64xf32, #tpu.memory_space<vmem>>, vector<1x64xf32>
    tpu.vector_store %arg7[%c0_10, %c0_11], %14 {strides = array<i32>} : memref<1x64xf32, #tpu.memory_space<vmem>>, vector<1x64xf32>,
    %c0_i32_12 = arith.constant 0 : i32
    %16 = arith.cmpi eq, %arg1, %c0_i32_12 : i32
    %17 = arith.extui %16 : i1 to i32
    %c0_i32_13 = arith.constant 0 : i32
    %18 = arith.cmpi ne, %17, %c0_i32_13 : i32
    scf.if %18 {
      %c0_14 = arith.constant 0 : index
      %c0_15 = arith.constant 0 : index
      %19 = vector.load %arg3[%c0_14, %c0_15] : memref<64x64xf32, #tpu.memory_space<vmem>>, vector<64x64xf32>
      %c0_16 = arith.constant 0 : index
      %c0_17 = arith.constant 0 : index
      %20 = vector.load %arg6[%c0_16, %c0_17] : memref<1x64xf32, #tpu.memory_space<vmem>>, vector<1x64xf32>
      %cst_18 = arith.constant dense<0.000000e+00> : vector<1x64xf32>
      %21 = tpu.matmul %20, %19, %cst_18 {dimension_numbers = #tpu.dot_dimension_numbers<[1], [0], [0], [1], [0, 0, 1, 1], [], []>} : vector<1x64xf32>, vector<64x64xf32>, vector<1x64xf32> -> vector<1x64xf32>
      %c0_19 = arith.constant 0 : index
      %c0_20 = arith.constant 0 : index
      %22 = vector.load %arg7[%c0_19, %c0_20] : memref<1x64xf32, #tpu.memory_space<vmem>>, vector<1x64xf32>
      %cst_21 = arith.constant dense<0.000000e+00> : vector<1x64xf32>
      %23 = tpu.matmul %22, %19, %cst_21 {dimension_numbers = #tpu.dot_dimension_numbers<[1], [0], [0], [1], [0, 0, 1, 1], [], []>} : vector<1x64xf32>, vector<64x64xf32>, vector<1x64xf32> -> vector<1x64xf32>
      %24 = arith.mulf %21, %21 : vector<1x64xf32>
      %25 = arith.subf %23, %24 : vector<1x64xf32>
      %cst_22 = arith.constant 0.000000e+00 : f32
      %26 = vector.broadcast %cst_22 : f32 to vector<1x64xf32>
      %27 = arith.maximumf %25, %26 : vector<1x64xf32>
      %c0_23 = arith.constant 0 : index
      %c0_24 = arith.constant 0 : index
      %c0_25 = arith.constant 0 : index
      %28 = vector.load %arg4[%c0_23, %c0_24, %c0_25] : memref<1x1x64xf32, #tpu.memory_space<vmem>>, vector<1x1x64xf32>
      %29 = vector.shape_cast %28 : vector<1x1x64xf32> to vector<1x64xf32>
      %30 = vector.shape_cast %21 : vector<1x64xf32> to vector<1x1x64xf32>
      tpu.vector_store %arg4[%c0_23, %c0_24, %c0_25], %30 {strides = array<i32>} : memref<1x1x64xf32, #tpu.memory_space<vmem>>, vector<1x1x64xf32>,
      %cst_26 = arith.constant 9.99999974E-6 : f32
      %31 = vector.broadcast %cst_26 : f32 to vector<1x64xf32>
      %32 = arith.addf %27, %31 : vector<1x64xf32>
      %33 = math.rsqrt %32 : vector<1x64xf32>
      %c0_27 = arith.constant 0 : index
      %c0_28 = arith.constant 0 : index
      %c0_29 = arith.constant 0 : index
      %34 = vector.load %arg5[%c0_27, %c0_28, %c0_29] : memref<1x1x64xf32, #tpu.memory_space<vmem>>, vector<1x1x64xf32>
      %35 = vector.shape_cast %34 : vector<1x1x64xf32> to vector<1x64xf32>
      %36 = vector.shape_cast %33 : vector<1x64xf32> to vector<1x1x64xf32>
      tpu.vector_store %arg5[%c0_27, %c0_28, %c0_29], %36 {strides = array<i32>} : memref<1x1x64xf32, #tpu.memory_space<vmem>>, vector<1x1x64xf32>,
    } else {
    }
    return
  }
  func.func @transform_0(%arg0: i32, %arg1: i32) -> (i32, i32, i32) {
    %c0_i32 = arith.constant 0 : i32
    %c0_i32_0 = arith.constant 0 : i32
    return %arg0, %arg1, %c0_i32 : i32, i32, i32
  }
  func.func @transform_1(%arg0: i32, %arg1: i32) -> (i32, i32) {
    %c0_i32 = arith.constant 0 : i32
    %c0_i32_0 = arith.constant 0 : i32
    %c0_i32_1 = arith.constant 0 : i32
    return %c0_i32, %c0_i32_0 : i32, i32
  }
  func.func @transform_2(%arg0: i32, %arg1: i32) -> (i32, i32, i32) {
    %c0_i32 = arith.constant 0 : i32
    %c0_i32_0 = arith.constant 0 : i32
    %c0_i32_1 = arith.constant 0 : i32
    return %arg0, %c0_i32, %c0_i32_0 : i32, i32, i32
  }
  func.func @transform_3(%arg0: i32, %arg1: i32) -> (i32, i32, i32) {
    %c0_i32 = arith.constant 0 : i32
    %c0_i32_0 = arith.constant 0 : i32
    %c0_i32_1 = arith.constant 0 : i32
    return %arg0, %c0_i32, %c0_i32_0 : i32, i32, i32
  }
}

</mosaic_0001>

<bundles_post_ra>
// kernel: tpu_custom_call.1
= control target key start
LH: loop header
LB: loop body
LE: loop exit
PB: predicated region body
PF: predicated region fallthrough
CT: control target
= control target key end

     0   :  { %9 = vsyncpa [#allocation5], 0  ;;  %s1080_s0 = inlined_call_operand.vmem [shape: f32[2,256,64], index: 0, kind: input, shape index: {}]   ;;  %s1081_s1 = inlined_call_operand.vmem [shape: f32[64,64], index: 1, kind: input, shape index: {}]   ;;  %s1082_s2 = inlined_call_operand.hbm [shape: f32[2,1,64], index: 2, kind: output, shape index: {0}]   ;;  %s1083_s3 = inlined_call_operand.hbm [shape: f32[2,1,64], index: 3, kind: output, shape index: {1}]  }
   0x1   :  { %11 = vsyncpa [#allocation5 + $0x1], 0 }
   0x2   :  { %12 = vsyncpa [#allocation7], 0 }
   0x3   :  { %14 = vsyncpa [#allocation7 + $0x1], 0  ;;  %s833_s12 = smov 0   ;;  %s835_s13 = smov 0  }
   0x4   :  { %s837_s14 = smov 0   ;;  %s839_s15 = smov 0  }
   0x5   :  { %s841_s16 = smov 0   ;;  %s843_s17 = smov 0  }
   0x6 LB: > { %s625_s18 = sadd.s32 4294967295, %s810_s17   ;;  %s626_s19 = sadd.s32 4294967294, %s810_s17   ;;  %s810_s17 = sphi %s843_s17, %s20_s17   ;;  %s806_s16 = sphi %s841_s16, %s1090_s16   ;;  %s802_s15 = sphi %s839_s15, %s1089_s15   ;;  %s798_s14 = sphi %s837_s14, %s1088_s14   ;;  %s794_s13 = sphi %s835_s13, %s1087_s13   ;;  %s790_s12 = sphi %s833_s12, %s1086_s12  }
   0x7   : > { %s32_s20 = sadd.s32 1, %s806_s16  ;;  %s88_s21 = sadd.s32 1, %s798_s14 }
   0x8   : > { %p34_p0 = scmp.ge.s32.totalorder %s32_s20, 2  ;;  %p98_p1 = scmp.ne.s32.totalorder %s798_s14, %s794_s13 }
   0x9   : > { %p99_p2 = scmp.eq.s32.totalorder %s625_s18, 1  ;;  %p104_p3 = scmp.ne.s32.totalorder %s794_s13, %s790_s12 }
   0xa   : > { %s1092_s20 = smov (%p34_p0, %s32_s20), 0  ;;  %p105_p5 = scmp.eq.s32.totalorder %s626_s19, 1 }
   0xb   : > { %p873_p4 = por %p99_p2, %p98_p1  ;;  %s85_s23 = ssub.s32 %s806_s16, %s1092_s20 }
   0xc   : > { %p629_p6 = scmp.ge.s32.totalorder %s810_s17, 1  ;;  %p86_p7 = scmp.eq.s32.totalorder %s85_s23, 0 }
   0xd   : > { %p880_p8 = por %p105_p5, %p104_p3  ;;  %p165_p9 = scmp.lt.s32.totalorder %s810_s17, 3 }
   0xe   : > { %s886_s25 = scalar_select %p86_p7, %s798_s14, %s88_s21  }
   0xf   : > { %p166_p10 = pnand %p629_p6, %p165_p9 }
  0x10   : > { %p197_p11 = scmp.lt.s32.totalorder (!%p166_p10), %s802_s15, 1  ;;  %s1022_s30 = sand.u32 (!%p166_p10), 1, %s794_s13  }
  0x11   : > { %169 = sbr.rel (%p166_p10) target bundleno = 269 (0x10d), region = 28  ;;  %s511_s6 = scalar_lea.hbm (!%p166_p10), %s1082_s2, %s802_s15 }
  0x12   : > { %s189_s7 = scalar_lea.vmem (!%p166_p10), [#allocation4], %s1022_s30  ;;  %s515_s9 = sshll.u32 (!%p166_p10), %s511_s6, 4  ;;  %s516_s9 = int_to_ptr.hbm [resolvable:$true] %s515_s9 }
  0x13   : > { %s499_s10 = scalar_lea.sflag (!%p166_p10), [#allocation5], %s1022_s30  ;;  %s714_s11 = sshra.s32 (!%p166_p10), %s516_s9, 4  ;;  %s715_s11 = int_to_ptr.hbm [resolvable:$true] %s714_s11 }
  0x14   : > { %s716_s18 = scalar_lea.hbm (!%p166_p10), %s715_s11, 1  ;;  %s720_s23 = scalar_lea.hbm (!%p166_p10), %s1082_s2, 2 }
  0x15   : > { %p717_p12 = scmp.ne.s32.totalorder (!%p166_p10), %s715_s11, %s716_s18  ;;  %p721_p1 = scmp.lt.s32.totalorder (!%p166_p10), %s715_s11, %s1082_s2 }
  0x16   : > { %v433_v0 = vld [vmem:[%s1081_s1 + $0x38] sm:$0xff]  ;;  %v432_v1 = vld [vmem:[%s1081_s1 + $0x30] sm:$0xff]  ;;  %vm210_vm0 = vcmask 516096   ;;  %v812_v2 = vmov 0.0   ;;  %v431_v3 = vld [vmem:[%s1081_s1 + $0x28] sm:$0xff]  ;;  %s198_s5 = scalar_select %p197_p11, %s802_s15, 1 }
  0x17   : > { %446 = vmatpush.msra.mxu0 %v433_v0  ;;  %470 = vmatpush.msra.mxu1 %v433_v0  ;;  %211 = vst.msk [vmem:[#allocation2] sm:$0x1] %vm210_vm0, %v812_v2  ;;  %v430_v4 = vld [vmem:[%s1081_s1 + $0x20] sm:$0xff]  ;;  %vm246_vm1 = vcmask 523264   ;;  %v429_v5 = vld [vmem:[%s1081_s1 + $0x18] sm:$0xff]  ;;  %v428_v13 = vld [vmem:[%s1081_s1 + $0x10] sm:$0xff]  ;;  %p718_p13 = pnand %p717_p12, %p873_p4  ;;  %p722_p2 = scmp.lt.s32.totalorder %s720_s23, %s716_s18 }
  0x18   : > { %212 = vst.msk [vmem:[#allocation3] sm:$0x1] %vm210_vm0, %v812_v2  ;;  %s636_s8 = sshll.u32 %s198_s5, 8  ;;  %v427_v17 = vld [vmem:[%s1081_s1 + $0x8] sm:$0xff]  ;;  %v426_v21 = vld [vmem:[%s1081_s1] sm:$0xff] }
  0x19   : > { %447 = vmatpush.msra.mxu0 %v432_v1  ;;  %471 = vmatpush.msra.mxu1 %v432_v1  ;;  %s910_s19 = scalar_lea.vmem %s1080_s0, %s636_s8  ;;  %s513_s8 = sshll.u32 %s189_s7, 4  ;;  %s514_s8 = int_to_ptr.vmem [resolvable:$true] %s513_s8 }
  0x1a   : > { %v213_v6 = vld [vmem:[%s910_s19] sm:$0xff]  ;;  %v214_v7 = vld [vmem:[%s910_s19 + $0x8] sm:$0xff]  ;;  %v215_v8 = vld [vmem:[%s910_s19 + $0x10] sm:$0xff]  ;;  %p719_p0 = pneg %p718_p13  ;;  %p723_p3 = por %p722_p2, %p721_p1 }
  0x1b   : > { %448 = vmatpush.msra.mxu0 %v431_v3  ;;  %472 = vmatpush.msra.mxu1 %v431_v3  ;;  %v216_v9 = vld [vmem:[%s910_s19 + $0x18] sm:$0xff]  ;;  %v247_v10 = vsel %vm246_vm1, %v213_v6, 0.0  ;;  %v248_v11 = vsel %vm246_vm1, %v214_v7, 0.0  ;;  %v250_v12 = vsel %vm246_vm1, %v215_v8, 0.0  ;;  %v217_v14 = vld [vmem:[%s910_s19 + $0x20] sm:$0xff]  ;;  %v218_v18 = vld [vmem:[%s910_s19 + $0x28] sm:$0xff]  ;;  %v320_v28 = vmul.f32 %v213_v6, %v213_v6 }
  0x1c   : > { %v249_v15 = vadd.f32 %v248_v11, %v247_v10  ;;  %v252_v16 = vsel %vm246_vm1, %v216_v9, 0.0  ;;  %v254_v20 = vsel %vm246_vm1, %v217_v14, 0.0  ;;  %v219_v22 = vld [vmem:[%s910_s19 + $0x30] sm:$0xff]  ;;  %v256_v24 = vsel %vm246_vm1, %v218_v18, 0.0  ;;  %v220_v25 = vld [vmem:[%s910_s19 + $0x38] sm:$0xff]  ;;  %v221_v29 = vld [vmem:[%s910_s19 + $0x40] sm:$0xff]  ;;  %p724_p5 = pnand %p723_p3, %p719_p0 }
  0x1d   : > { %449 = vmatpush.msra.mxu0 %v430_v4  ;;  %473 = vmatpush.msra.mxu1 %v430_v4  ;;  %v258_v27 = vsel %vm246_vm1, %v219_v22, 0.0  ;;  %v260_v31 = vsel %vm246_vm1, %v220_v25, 0.0  ;;  %v321_v32 = vmul.f32 %v214_v7, %v214_v7  ;;  %v322_v33 = vmul.f32 %v215_v8, %v215_v8  ;;  %v222_v34 = vld [vmem:[%s910_s19 + $0x48] sm:$0xff]  ;;  %v223_v39 = vld [vmem:[%s910_s19 + $0x50] sm:$0xff]  ;;  %v224_v45 = vld [vmem:[%s910_s19 + $0x58] sm:$0xff] }
  0x1e   : > { %v251_v19 = vadd.f32 %v250_v12, %v249_v15  ;;  %v262_v36 = vsel %vm246_vm1, %v221_v29, 0.0  ;;  %v323_v37 = vmul.f32 %v216_v9, %v216_v9  ;;  %v352_v38 = vsel %vm246_vm1, %v320_v28, 0.0  ;;  %v225_v51 = vld [vmem:[%s910_s19 + $0x60] sm:$0xff]  ;;  %v226_v57 = vld [vmem:[%s910_s19 + $0x68] sm:$0xff]  ;;  %v227_v63 = vld [vmem:[%s910_s19 + $0x70] sm:$0xff] }
  0x1f   : > { %450 = vmatpush.msra.mxu0 %v429_v5  ;;  %474 = vmatpush.msra.mxu1 %v429_v5  ;;  %v264_v41 = vsel %vm246_vm1, %v222_v34, 0.0  ;;  %v324_v42 = vmul.f32 %v217_v14, %v217_v14  ;;  %v353_v43 = vsel %vm246_vm1, %v321_v32, 0.0  ;;  %v355_v44 = vsel %vm246_vm1, %v322_v33, 0.0  ;;  %v228_v5 = vld [vmem:[%s910_s19 + $0x78] sm:$0xff]  ;;  %v229_v11 = vld [vmem:[%s910_s19 + $0x80] sm:$0xff] }
  0x20   : > { %v253_v23 = vadd.f32 %v252_v16, %v251_v19  ;;  %v354_v47 = vadd.f32 %v353_v43, %v352_v38  ;;  %v266_v48 = vsel %vm246_vm1, %v223_v39, 0.0  ;;  %v325_v49 = vmul.f32 %v218_v18, %v218_v18 }
  0x21   : > { %451 = vmatpush.msra.mxu0 %v428_v13  ;;  %475 = vmatpush.msra.mxu1 %v428_v13  ;;  %v357_v50 = vsel %vm246_vm1, %v323_v37, 0.0  ;;  %v268_v54 = vsel %vm246_vm1, %v224_v45, 0.0  ;;  %v326_v55 = vmul.f32 %v219_v22, %v219_v22  ;;  %v359_v56 = vsel %vm246_vm1, %v324_v42, 0.0 }
  0x22   : > { %v255_v26 = vadd.f32 %v254_v20, %v253_v23  ;;  %v356_v53 = vadd.f32 %v355_v44, %v354_v47  ;;  %v270_v60 = vsel %vm246_vm1, %v225_v51, 0.0  ;;  %v327_v61 = vmul.f32 %v220_v25, %v220_v25  ;;  %v231_v23 = vld [vmem:[%s910_s19 + $0x90] sm:$0xff] }
  0x23   : > { %452 = vmatpush.msra.mxu0 %v427_v17  ;;  %476 = vmatpush.msra.mxu1 %v427_v17  ;;  %v361_v62 = vsel %vm246_vm1, %v325_v49, 0.0  ;;  %v272_v2 = vsel %vm246_vm1, %v226_v57, 0.0  ;;  %v328_v3 = vmul.f32 %v221_v29, %v221_v29  ;;  %v363_v4 = vsel %vm246_vm1, %v326_v55, 0.0  ;;  %v230_v17 = vld [vmem:[%s910_s19 + $0x88] sm:$0xff]  ;;  %v232_v29 = vld [vmem:[%s910_s19 + $0x98] sm:$0xff]  ;;  %v235_v47 = vld [vmem:[%s910_s19 + $0xb0] sm:$0xff] }
  0x24   : > { %v257_v30 = vadd.f32 %v256_v24, %v255_v26  ;;  %v358_v59 = vadd.f32 %v357_v50, %v356_v53  ;;  %v274_v8 = vsel %vm246_vm1, %v227_v63, 0.0  ;;  %v329_v9 = vmul.f32 %v222_v34, %v222_v34  ;;  %v236_v53 = vld [vmem:[%s910_s19 + $0xb8] sm:$0xff] }
  0x25   : > { %453 = vmatpush.msra.mxu0 %v426_v21  ;;  %477 = vmatpush.msra.mxu1 %v426_v21  ;;  %v365_v10 = vsel %vm246_vm1, %v327_v61, 0.0  ;;  %v276_v14 = vsel %vm246_vm1, %v228_v5, 0.0  ;;  %v330_v15 = vmul.f32 %v223_v39, %v223_v39  ;;  %v367_v16 = vsel %vm246_vm1, %v328_v3, 0.0 }
  0x26   : > { %v259_v35 = vadd.f32 %v258_v27, %v257_v30  ;;  %v360_v1 = vadd.f32 %v359_v56, %v358_v59  ;;  %v278_v20 = vsel %vm246_vm1, %v229_v11, 0.0  ;;  %v331_v21 = vmul.f32 %v224_v45, %v224_v45  ;;  %v237_v59 = vld [vmem:[%s910_s19 + $0xc0] sm:$0xff] }
  0x27   : > { %v369_v22 = vsel %vm246_vm1, %v329_v9, 0.0  ;;  %v280_v26 = vsel %vm246_vm1, %v230_v17, 0.0  ;;  %v332_v27 = vmul.f32 %v225_v51, %v225_v51  ;;  %v371_v28 = vsel %vm246_vm1, %v330_v15, 0.0 }
  0x28   : > { %v261_v40 = vadd.f32 %v260_v31, %v259_v35  ;;  %v362_v7 = vadd.f32 %v361_v62, %v360_v1  ;;  %v282_v32 = vsel %vm246_vm1, %v231_v23, 0.0  ;;  %v333_v33 = vmul.f32 %v226_v57, %v226_v57  ;;  %v233_v35 = vld [vmem:[%s910_s19 + $0xa0] sm:$0xff]  ;;  %v238_v1 = vld [vmem:[%s910_s19 + $0xc8] sm:$0xff] }
  0x29   : > { %v373_v34 = vsel %vm246_vm1, %v331_v21, 0.0  ;;  %v284_v38 = vsel %vm246_vm1, %v232_v29, 0.0  ;;  %v334_v39 = vmul.f32 %v227_v63, %v227_v63  ;;  %v286_v44 = vsel %vm246_vm1, %v233_v35, 0.0 }
  0x2a   : > { %v263_v46 = vadd.f32 %v262_v36, %v261_v40  ;;  %v364_v13 = vadd.f32 %v363_v4, %v362_v7  ;;  %v375_v40 = vsel %vm246_vm1, %v332_v27, 0.0  ;;  %v335_v45 = vmul.f32 %v228_v5, %v228_v5  ;;  %v239_v7 = vld [vmem:[%s910_s19 + $0xd0] sm:$0xff] }
  0x2b   : > { %v336_v51 = vmul.f32 %v229_v11, %v229_v11  ;;  %v290_v56 = vsel %vm246_vm1, %v235_v47, 0.0  ;;  %v337_v57 = vmul.f32 %v230_v17, %v230_v17  ;;  %v292_v62 = vsel %vm246_vm1, %v236_v53, 0.0 }
  0x2c   : > { %v265_v52 = vadd.f32 %v264_v41, %v263_v46  ;;  %v366_v19 = vadd.f32 %v365_v10, %v364_v13  ;;  %v234_v41 = vld [vmem:[%s910_s19 + $0xa8] sm:$0xff]  ;;  %v377_v46 = vsel %vm246_vm1, %v333_v33, 0.0  ;;  %v338_v63 = vmul.f32 %v231_v23, %v231_v23  ;;  %v240_v13 = vld [vmem:[%s910_s19 + $0xd8] sm:$0xff] }
  0x2d   : > { %v288_v50 = vsel %vm246_vm1, %v234_v41, 0.0  ;;  %v294_v4 = vsel %vm246_vm1, %v237_v59, 0.0  ;;  %v339_v5 = vmul.f32 %v232_v29, %v232_v29  ;;  %v296_v10 = vsel %vm246_vm1, %v238_v1, 0.0 }
  0x2e   : > { %v267_v58 = vadd.f32 %v266_v48, %v265_v52  ;;  %v368_v25 = vadd.f32 %v367_v16, %v366_v19  ;;  %v379_v52 = vsel %vm246_vm1, %v334_v39, 0.0  ;;  %v340_v11 = vmul.f32 %v233_v35, %v233_v35  ;;  %v241_v19 = vld [vmem:[%s910_s19 + $0xe0] sm:$0xff] }
  0x2f   : > { %v298_v16 = vsel %vm246_vm1, %v239_v7, 0.0  ;;  %v341_v17 = vmul.f32 %v234_v41, %v234_v41  ;;  %v342_v23 = vmul.f32 %v235_v47, %v235_v47  ;;  %v343_v29 = vmul.f32 %v236_v53, %v236_v53 }
  0x30   : > { %v269_v0 = vadd.f32 %v268_v54, %v267_v58  ;;  %v370_v31 = vadd.f32 %v369_v22, %v368_v25  ;;  %v381_v58 = vsel %vm246_vm1, %v335_v45, 0.0  ;;  %v300_v22 = vsel %vm246_vm1, %v240_v13, 0.0  ;;  %v242_v25 = vld [vmem:[%s910_s19 + $0xe8] sm:$0xff] }
  0x31   : > { %v344_v35 = vmul.f32 %v237_v59, %v237_v59  ;;  %v345_v41 = vmul.f32 %v238_v1, %v238_v1 }
  0x32   : > { %v271_v6 = vadd.f32 %v270_v60, %v269_v0  ;;  %v372_v37 = vadd.f32 %v371_v28, %v370_v31  ;;  %v383_v0 = vsel %vm246_vm1, %v336_v51, 0.0  ;;  %v302_v28 = vsel %vm246_vm1, %v241_v19, 0.0  ;;  %v243_v31 = vld [vmem:[%s910_s19 + $0xf0] sm:$0xff] }
  0x33   : > { %v399_v47 = vsel %vm246_vm1, %v344_v35, 0.0  ;;  %v401_v51 = vsel %vm246_vm1, %v345_v41, 0.0 }
  0x34   : > { %v273_v12 = vadd.f32 %v272_v2, %v271_v6  ;;  %v374_v43 = vadd.f32 %v373_v34, %v372_v37  ;;  %v385_v6 = vsel %vm246_vm1, %v337_v57, 0.0  ;;  %v304_v34 = vsel %vm246_vm1, %v242_v25, 0.0  ;;  %v244_v37 = vld [vmem:[%s910_s19 + $0xf8] sm:$0xff] }
  0x35   : > { %v308_v45 = vsel %vm246_vm1, %v244_v37, 0.0 }
  0x36   : > { %v275_v18 = vadd.f32 %v274_v8, %v273_v12  ;;  %v376_v49 = vadd.f32 %v375_v40, %v374_v43  ;;  %v387_v12 = vsel %vm246_vm1, %v338_v63, 0.0  ;;  %v306_v40 = vsel %vm246_vm1, %v243_v31, 0.0 }
  0x38   : > { %v277_v24 = vadd.f32 %v276_v14, %v275_v18  ;;  %v378_v55 = vadd.f32 %v377_v46, %v376_v49  ;;  %v389_v18 = vsel %vm246_vm1, %v339_v5, 0.0  ;;  %v346_v46 = vmul.f32 %v239_v7, %v239_v7 }
  0x3a   : > { %v279_v30 = vadd.f32 %v278_v20, %v277_v24  ;;  %v380_v61 = vadd.f32 %v379_v52, %v378_v55  ;;  %v391_v24 = vsel %vm246_vm1, %v340_v11, 0.0  ;;  %v403_v55 = vsel %vm246_vm1, %v346_v46, 0.0 }
  0x3c   : > { %v281_v36 = vadd.f32 %v280_v26, %v279_v30  ;;  %v382_v3 = vadd.f32 %v381_v58, %v380_v61  ;;  %v393_v30 = vsel %vm246_vm1, %v341_v17, 0.0  ;;  %v349_v58 = vmul.f32 %v242_v25, %v242_v25 }
  0x3e   : > { %v283_v42 = vadd.f32 %v282_v32, %v281_v36  ;;  %v384_v9 = vadd.f32 %v383_v0, %v382_v3  ;;  %v395_v36 = vsel %vm246_vm1, %v342_v23, 0.0  ;;  %v409_v3 = vsel %vm246_vm1, %v349_v58, 0.0 }
  0x40   : > { %v285_v48 = vadd.f32 %v284_v38, %v283_v42  ;;  %v386_v15 = vadd.f32 %v385_v6, %v384_v9  ;;  %v397_v42 = vsel %vm246_vm1, %v343_v29, 0.0  ;;  %v245_v9 = vld [vmem:[#allocation2] sm:$0x1] }
  0x42   : > { %v287_v54 = vadd.f32 %v286_v44, %v285_v48  ;;  %v388_v21 = vadd.f32 %v387_v12, %v386_v15 }
  0x44   : > { %v289_v60 = vadd.f32 %v288_v50, %v287_v54  ;;  %v390_v27 = vadd.f32 %v389_v18, %v388_v21  ;;  %v347_v50 = vmul.f32 %v240_v13, %v240_v13  ;;  %v348_v54 = vmul.f32 %v241_v19, %v241_v19  ;;  %v319_v21 = vld [vmem:[#allocation3] sm:$0x1] }
  0x46   : > { %v291_v2 = vadd.f32 %v290_v56, %v289_v60  ;;  %v392_v33 = vadd.f32 %v391_v24, %v390_v27  ;;  %v405_v59 = vsel %vm246_vm1, %v347_v50, 0.0  ;;  %v407_v63 = vsel %vm246_vm1, %v348_v54, 0.0 }
  0x48   : > { %v293_v8 = vadd.f32 %v292_v62, %v291_v2  ;;  %v394_v39 = vadd.f32 %v393_v30, %v392_v33  ;;  %v350_v62 = vmul.f32 %v243_v31, %v243_v31  ;;  %v351_v2 = vmul.f32 %v244_v37, %v244_v37 }
  0x4a   : > { %v295_v14 = vadd.f32 %v294_v4, %v293_v8  ;;  %v396_v44 = vadd.f32 %v395_v36, %v394_v39  ;;  %v411_v6 = vsel %vm246_vm1, %v350_v62, 0.0 }
  0x4c   : > { %v297_v20 = vadd.f32 %v296_v10, %v295_v14  ;;  %v398_v49 = vadd.f32 %v397_v42, %v396_v44  ;;  %v413_v10 = vsel %vm246_vm1, %v351_v2, 0.0 }
  0x4e   : > { %v299_v26 = vadd.f32 %v298_v16, %v297_v20  ;;  %v400_v53 = vadd.f32 %v399_v47, %v398_v49 }
  0x50   : > { %v301_v32 = vadd.f32 %v300_v22, %v299_v26  ;;  %v402_v57 = vadd.f32 %v401_v51, %v400_v53 }
  0x52   : > { %v303_v38 = vadd.f32 %v302_v28, %v301_v32  ;;  %v404_v61 = vadd.f32 %v403_v55, %v402_v57 }
  0x54   : > { %v305_v43 = vadd.f32 %v304_v34, %v303_v38  ;;  %v406_v1 = vadd.f32 %v405_v59, %v404_v61 }
  0x56   : > { %v307_v48 = vadd.f32 %v306_v40, %v305_v43  ;;  %v408_v5 = vadd.f32 %v407_v63, %v406_v1 }
  0x58   : > { %v309_v52 = vadd.f32 %v308_v45, %v307_v48  ;;  %v410_v8 = vadd.f32 %v409_v3, %v408_v5 }
  0x5a   : > { %v310_v56 = vrot.slane %v309_v52, 4  ;;  %v412_v12 = vadd.f32 %v411_v6, %v410_v8 }
  0x5c   : > { %v311_v60 = vadd.f32 %v310_v56, %v309_v52  ;;  %v414_v14 = vadd.f32 %v413_v10, %v412_v12 }
  0x5e   : > { %v312_v0 = vrot.slane %v311_v60, 2  ;;  %v415_v15 = vrot.slane %v414_v14, 4 }
  0x60   : > { %v313_v4 = vadd.f32 %v312_v0, %v311_v60  ;;  %v416_v16 = vadd.f32 %v415_v15, %v414_v14 }
  0x62   : > { %v314_v7 = vrot.slane %v313_v4, 1  ;;  %v417_v17 = vrot.slane %v416_v16, 2 }
  0x64   : > { %v315_v11 = vadd.f32 %v314_v7, %v313_v4  ;;  %v418_v18 = vadd.f32 %v417_v17, %v416_v16 }
  0x66   : > { %v316_v13 = vadd.f32 %v315_v11, %v245_v9  ;;  %v419_v20 = vrot.slane %v418_v18, 1 }
  0x68   : > { %318 = vst.msk [vmem:[#allocation2] sm:$0x1] %vm210_vm0, %v316_v13  ;;  %v420_v22 = vadd.f32 %v419_v20, %v418_v18 }
  0x6a   : > { %v421_v23 = vadd.f32 %v420_v22, %v319_v21 }
  0x6c   : > { %422 = vst.msk [vmem:[#allocation3] sm:$0x1] %vm210_vm0, %v421_v23 }
  0x6f   : > { %v434_v19 = vld [vmem:[#allocation2] sm:$0x1] }
  0x70   : > { %632 = vmatmul.msk.f32.vlgmr.msra.gmra.mxu0 %vm246_vm1, %v434_v19 }
  0x73   : > { %v458_v24 = vld [vmem:[#allocation3] sm:$0x1] }
  0x74   : > { %633 = vmatmul.msk.f32.vlgmr.msra.gmra.mxu1 %vm246_vm1, %v458_v24 }
  0xed   : > { %v455_v25 = vpop.f32.mrf.mxu0 }
  0xee   : > { %485 = vst.msk [vmem:[%s189_s7] sm:$0x1] %vm210_vm0, %v455_v25 }
  0xef   : > { %727 = shalt.err (!%p724_p5)
}
  0xf0   : > { %637 = dma.vmem_to_hbm [thread:$0]  (%p873_p4), %s514_s8, 16, %s516_s9, %s499_s10   ;;  %v482_v26 = vmul.f32 %v455_v25, %v455_v25 }
  0xf1   : > { %v479_v27 = vpop.f32.mrf.mxu1  ;;  %s524_s4 = scalar_lea.hbm %s1083_s3, %s802_s15  ;;  %s195_s5 = scalar_lea.vmem [#allocation6], %s1022_s30 }
  0xf2   : > { %v483_v28 = vsub.f32 %v479_v27, %v482_v26  ;;  %s526_s6 = sshll.u32 %s195_s5, 4  ;;  %s528_s7 = sshll.u32 %s524_s4, 4  ;;  %s527_s6 = int_to_ptr.vmem [resolvable:$true] %s526_s6  ;;  %s529_s7 = int_to_ptr.hbm [resolvable:$true] %s528_s7 }
  0xf3   : > { %s503_s8 = scalar_lea.sflag [#allocation7], %s1022_s30  ;;  %s742_s9 = sshra.s32 %s529_s7, 4  ;;  %s743_s9 = int_to_ptr.hbm [resolvable:$true] %s742_s9 }
  0xf4   : > { %v484_v29 = vmax.f32 %v483_v28, 0.0  ;;  %s744_s10 = scalar_lea.hbm %s743_s9, 1  ;;  %s748_s18 = scalar_lea.hbm %s1083_s3, 2 }
  0xf5   : > { %p745_p6 = scmp.ne.s32.totalorder %s743_s9, %s744_s10  ;;  %p749_p10 = scmp.lt.s32.totalorder %s743_s9, %s1083_s3 }
  0xf6   : > { %v486_v30 = vadd.f32 1e-05, %v484_v29  ;;  %p750_p11 = scmp.lt.s32.totalorder %s748_s18, %s744_s10 }
  0xf7   : > { %p746_p7 = pnand %p745_p6, %p873_p4 }
  0xf8   : > { %698 = vrsqrt.f32 %v486_v30  ;;  %vm493_vm3 = vweird.f32 %v486_v30  ;;  %p751_p12 = por %p750_p11, %p749_p10 }
  0xf9   : > { %p747_p9 = pneg %p746_p7 }
  0xfb   : > { %p752_p13 = pnand %p751_p12, %p747_p9 }
  0xfe   : > { %v699_v31 = vpop.eup %698 }
  0xff   : > { %v488_v32 = vmul.f32 %v699_v31, %v486_v30  ;;  %vm494_vm2 = vweird.f32 %v699_v31 }
 0x100   : > { %vm495_vm4 = vmor %vm493_vm3, %vm494_vm2 }
 0x101   : > { %v489_v33 = vmul.f32 %v699_v31, %v488_v32 }
 0x103   : > { %v490_v34 = vmul.f32 0.5, %v489_v33 }
 0x105   : > { %v491_v35 = vsub.f32 1.5, %v490_v34 }
 0x107   : > { %v492_v36 = vmul.f32 %v699_v31, %v491_v35 }
 0x109   : > { %v496_v37 = vsel %vm495_vm4, %v699_v31, %v492_v36 }
 0x10a   : > { %497 = vst.msk [vmem:[%s195_s5] sm:$0x1] %vm210_vm0, %v496_v37 }
 0x10b   : > { %755 = shalt.err (!%p752_p13)
}
 0x10c   : > { %638 = dma.vmem_to_hbm [thread:$0]  (%p873_p4), %s527_s6, 16, %s529_s7, %s503_s8  }
 0x10d PF: > { %p648_p0 = scmp.ge.s32.totalorder %s810_s17, 2  ;;  %s540_s30 = sand.u32 1, %s790_s12  }
 0x10e   : > { %s541_s23 = scalar_lea.sflag [#allocation5], %s540_s30 }
 0x10f   : > { %p642_p1 = pnand %p648_p0, %p880_p8 }
 0x111   : > { %p643_p2 = pneg %p642_p1 }
 0x113   : > { %781 = dma.done.wait (%p643_p2), %s541_s23, 16  }
 0x114   : > { %783 = vsyncadd (%p643_p2), %s541_s23, 4294967280  ;;  %s550_s26 = scalar_lea.sflag [#allocation7], %s540_s30 }
 0x115   : > { %785 = dma.done.wait (%p643_p2), %s550_s26, 16  }
 0x116   : > { %787 = vsyncadd (%p643_p2), %s550_s26, 4294967280  ;;  %s20_s17 = sadd.s32 1, %s810_s17   ;;  %s1086_s12 = smov %s794_s13 }
 0x117   : > { %p17_p3 = scmp.ge.s32.totalorder %s20_s17, 4   ;;  %s1087_s13 = smov %s798_s14 }
 0x118   : > { %s1088_s14 = smov %s886_s25  ;;  %s1089_s15 = smov %s806_s16 }
 0x119   : > { %s1090_s16 = smov %s1092_s20  ;;  %19 = sbr.rel (!%p17_p3) target bundleno = 6 (0x6), region = 88 }
 0x11e   :  { %555 = vsyncpa [#allocation5], 1 }
 0x11f   :  { %557 = vsyncpa [#allocation5 + $0x1], 1 }
 0x120   :  { %558 = vsyncpa [#allocation7], 1 }
 0x121   :  { %560 = vsyncpa [#allocation7 + $0x1], 1 }

</bundles_post_ra>
